<compile_context>
chip_gen: v7x
topology: tpu7x:2x2x1
jax: 0.10.0
libtpu: 0.0.40
codegen_flags: <defaults>
</compile_context>

<pallas_src>
import numpy as np
import jax
import jax.numpy as jnp
from jax import lax
from jax.experimental import pallas as pl
from jax.experimental.pallas import tpu as pltpu

NUM_CLASSES = 3     # nn.Linear(cnn_features, 3)
CLS_PAD = 8         # classes padded to one sublane group


# ----------------------------------------------------------------------------
# Kernel: Linear(F -> 3) + ReLU + masked LogSoftmax, classes on sublanes.
# ----------------------------------------------------------------------------
def projection_kernel(x_ref, w_ref, b_ref, out_ref):
    # x_ref  : (tile, F)  f32  activations (rows on sublanes)
    # w_ref  : (8, F)     f32  Linear weight, rows >= NUM_CLASSES are zero
    # b_ref  : (8, 1)     f32  Linear bias,   rows >= NUM_CLASSES are zero
    # out_ref: (8, tile)  f32  log-probs, classes on sublanes / rows on lanes
    x = x_ref[...]
    w = w_ref[...]
    # (8, tile) = (8, F) · (tile, F)^T  — contract F on both operands (q@k^T form)
    logits = lax.dot_general(w, x, (((1,), (1,)), ((), ())),
                             preferred_element_type=jnp.float32)
    logits = logits + b_ref[...]           # bias broadcast along lanes
    logits = jnp.maximum(logits, 0.0)      # TimeDistributed default activation='relu'

    # Masked log-softmax over the class (sublane) axis; sublanes >= 3 are padding.
    cls = lax.broadcasted_iota(jnp.int32, logits.shape, 0)
    valid = cls < NUM_CLASSES
    masked = jnp.where(valid, logits, jnp.float32(-1e30))
    m = jnp.max(masked, axis=0, keepdims=True)                    # (1, tile)
    e = jnp.where(valid, jnp.exp(masked - m), 0.0)
    out_ref[...] = (masked - m) - jnp.log(jnp.sum(e, axis=0, keepdims=True))


# ----------------------------------------------------------------------------
# Wrapper
# ----------------------------------------------------------------------------
def prepare_params(params):
    """Pad the torch Linear (3, F)/(3,) params to sublane-aligned (8, F)/(8, 1).

    Called once, outside the per-call (jitted) path."""
    w = jnp.asarray(params["w"], jnp.float32)        # (3, F): torch (out, in)
    b = jnp.asarray(params["b"], jnp.float32)        # (3,)
    F = w.shape[1]
    w8 = jnp.zeros((CLS_PAD, F), jnp.float32).at[:NUM_CLASSES, :].set(w)
    b8 = jnp.zeros((CLS_PAD, 1), jnp.float32).at[:NUM_CLASSES, 0].set(b)
    return {"w8": w8, "b8": b8}


def _pick_tile(rows, row_tile):
    if rows > row_tile:
        return row_tile                    # multiple of 128; ragged tail handled by Pallas
    if rows >= 256:
        half = (rows // 2) // 128 * 128    # >=2 grid steps for v7x megacore while
        if half >= 128:                    # keeping the output block a multiple of 128
            return half
    return rows                            # single full-array block (tiny problem)


def projection_forward(prepared, x, *, row_tile=512, interpret=False):
    """x: (d0, d1, F) float32  ->  (d0, d1, 3) float32 log-probabilities."""
    d0, d1, F = x.shape
    rows = d0 * d1
    xf = x.reshape(rows, F)                # free reshape; the module's transposes cancel

    tile = _pick_tile(rows, row_tile)
    grid = (pl.cdiv(rows, tile),)

    cost = pl.CostEstimate(
        flops=2 * rows * F * CLS_PAD + 16 * rows * CLS_PAD,
        transcendentals=rows * (CLS_PAD + 1),
        bytes_accessed=rows * F * 4 + CLS_PAD * (F + 1) * 4 + CLS_PAD * rows * 4,
    )

    out_pad = pl.pallas_call(
        projection_kernel,
        out_shape=jax.ShapeDtypeStruct((CLS_PAD, rows), jnp.float32),
        grid_spec=pltpu.PrefetchScalarGridSpec(
            num_scalar_prefetch=0,
            grid=grid,
            in_specs=[
                pl.BlockSpec((tile, F), lambda i: (i, 0)),
                pl.BlockSpec((CLS_PAD, F), lambda i: (0, 0)),
                pl.BlockSpec((CLS_PAD, 1), lambda i: (0, 0)),
            ],
            out_specs=pl.BlockSpec((CLS_PAD, tile), lambda i: (0, i)),
        ),
        compiler_params=pltpu.CompilerParams(
            dimension_semantics=("parallel",)),
        cost_estimate=cost,
        interpret=interpret,
    )(xf, prepared["w8"], prepared["b8"])

    # Tiny (3, rows) slice + transpose outside the kernel (~12 B/row).
    return out_pad[:NUM_CLASSES, :].T.reshape(d0, d1, NUM_CLASSES)


# ----------------------------------------------------------------------------
# Pure-JAX reference mirroring the torch module exactly (f32 throughout,
# including the two cancelling transposes).
# ----------------------------------------------------------------------------
def reference_forward(params, x):
    d0, d1, F = x.shape
    xt = jnp.swapaxes(x, 0, 1)                       # transpose(1, 0)
    rows = xt.reshape(-1, F)
    y = jnp.dot(rows, params["w"].T,
                preferred_element_type=jnp.float32) + params["b"]
    y = jnp.maximum(y, 0.0)                          # TimeDistributed ReLU
    y = y.reshape(d1, d0, NUM_CLASSES)
    y = jnp.swapaxes(y, 0, 1)                        # transpose(1, 0)
    return jax.nn.log_softmax(y, axis=-1)            # LogSoftmax(dim=-1)


if __name__ == "__main__":
    # config['cnn_features'] = 16; Projection maps (d0, d1, 16) -> (d0, d1, 3).
    B, S, F = 2, 16, 16

    key = jax.random.PRNGKey(0)
    kx, kw, kb = jax.random.split(key, 3)
    x = jax.random.normal(kx, (B, S, F), dtype=jnp.float32)
    params = dict(
        # torch nn.Linear(F, 3): weight (out, in) = (3, F), bias (3,)
        w=0.2 * jax.random.normal(kw, (NUM_CLASSES, F), dtype=jnp.float32),
        b=0.1 * jax.random.normal(kb, (NUM_CLASSES,), dtype=jnp.float32),
    )

    prepared = prepare_params(params)                # padded once, outside jit
    fwd = jax.jit(projection_forward)
    out = jax.block_until_ready(fwd(prepared, x))
    ref = jax.block_until_ready(reference_forward(params, x))

    assert out.shape == (B, S, NUM_CLASSES), out.shape
    np.testing.assert_allclose(np.asarray(out), np.asarray(ref),
                               rtol=1e-3, atol=1e-3)
    print("KERNEL_OK")
</pallas_src>

<mosaic_0001>
module attributes {stable_mosaic.version = 11 : i64} {
  func.func @projection_kernel(%arg0: i32, %arg1: memref<32x16xf32, #tpu.memory_space<vmem>>, %arg2: memref<8x16xf32, #tpu.memory_space<vmem>>, %arg3: memref<8x1xf32, #tpu.memory_space<vmem>>, %arg4: memref<8x32xf32, #tpu.memory_space<vmem>>) attributes {dimension_semantics = [#tpu.dimension_semantics<parallel>], iteration_bounds = array<i64: 1>, scalar_prefetch = 0 : i64, scratch_operands = 0 : i64, tpu.core_type = #tpu.core_type<tc>, window_params = [{transform_indices = @transform_0, window_bounds = array<i64: 32, 16>}, {pipeline_mode = #tpu.pipeline_mode<synchronous>, transform_indices = @transform_1, window_bounds = array<i64: 8, 16>}, {pipeline_mode = #tpu.pipeline_mode<synchronous>, transform_indices = @transform_2, window_bounds = array<i64: 8, 1>}, {transform_indices = @transform_3, window_bounds = array<i64: 8, 32>}]} {
    %c0 = arith.constant 0 : index
    %c0_0 = arith.constant 0 : index
    %0 = vector.load %arg1[%c0, %c0_0] : memref<32x16xf32, #tpu.memory_space<vmem>>, vector<32x16xf32>
    %c0_1 = arith.constant 0 : index
    %c0_2 = arith.constant 0 : index
    %1 = vector.load %arg2[%c0_1, %c0_2] : memref<8x16xf32, #tpu.memory_space<vmem>>, vector<8x16xf32>
    %cst = arith.constant dense<0.000000e+00> : vector<8x32xf32>
    %2 = tpu.matmul %1, %0, %cst {dimension_numbers = #tpu.dot_dimension_numbers<[1], [1], [0], [0], [0, 0, 1, 0], [], []>} : vector<8x16xf32>, vector<32x16xf32>, vector<8x32xf32> -> vector<8x32xf32>
    %c0_3 = arith.constant 0 : index
    %c0_4 = arith.constant 0 : index
    %3 = vector.load %arg3[%c0_3, %c0_4] : memref<8x1xf32, #tpu.memory_space<vmem>>, vector<8x1xf32>
    %4 = vector.broadcast %3 : vector<8x1xf32> to vector<8x32xf32>
    %5 = arith.addf %2, %4 : vector<8x32xf32>
    %cst_5 = arith.constant 0.000000e+00 : f32
    %6 = vector.broadcast %cst_5 : f32 to vector<8x32xf32>
    %7 = arith.maximumf %5, %6 : vector<8x32xf32>
    %8 = tpu.iota {dimensions = array<i32: 0>} : vector<8x32xi32>
    %c3_i32 = arith.constant 3 : i32
    %9 = vector.broadcast %c3_i32 : i32 to vector<8x32xi32>
    %10 = arith.cmpi slt, %8, %9 : vector<8x32xi32>
    %cst_6 = arith.constant -1.000000e+30 : f32
    %11 = vector.broadcast %cst_6 : f32 to vector<8x32xf32>
    %12 = arith.select %10, %7, %11 : vector<8x32xi1>, vector<8x32xf32>
    %cst_7 = arith.constant dense<0xFF800000> : vector<32xf32>
    %13 = vector.multi_reduction <maximumf>, %12, %cst_7 [0] : vector<8x32xf32> to vector<32xf32>
    %14 = vector.shape_cast %13 : vector<32xf32> to vector<1x32xf32>
    %15 = vector.broadcast %14 : vector<1x32xf32> to vector<8x32xf32>
    %16 = arith.subf %12, %15 : vector<8x32xf32>
    %17 = math.exp %16 : vector<8x32xf32>
    %cst_8 = arith.constant 0.000000e+00 : f32
    %18 = vector.broadcast %cst_8 : f32 to vector<8x32xf32>
    %19 = arith.select %10, %17, %18 : vector<8x32xi1>, vector<8x32xf32>
    %20 = vector.broadcast %14 : vector<1x32xf32> to vector<8x32xf32>
    %21 = arith.subf %12, %20 : vector<8x32xf32>
    %cst_9 = arith.constant dense<0.000000e+00> : vector<32xf32>
    %22 = vector.multi_reduction <add>, %19, %cst_9 [0] : vector<8x32xf32> to vector<32xf32>
    %23 = vector.shape_cast %22 : vector<32xf32> to vector<1x32xf32>
    %24 = math.log %23 : vector<1x32xf32>
    %25 = vector.broadcast %24 : vector<1x32xf32> to vector<8x32xf32>
    %26 = arith.subf %21, %25 : vector<8x32xf32>
    %c0_10 = arith.constant 0 : index
    %c0_11 = arith.constant 0 : index
    %27 = vector.load %arg4[%c0_10, %c0_11] : memref<8x32xf32, #tpu.memory_space<vmem>>, vector<8x32xf32>
    tpu.vector_store %arg4[%c0_10, %c0_11], %26 {strides = array<i32>} : memref<8x32xf32, #tpu.memory_space<vmem>>, vector<8x32xf32>,
    return
  }
  func.func @transform_0(%arg0: i32) -> (i32, i32) {
    %c0_i32 = arith.constant 0 : i32
    %c0_i32_0 = arith.constant 0 : i32
    return %arg0, %c0_i32 : i32, i32
  }
  func.func @transform_1(%arg0: i32) -> (i32, i32) {
    %c0_i32 = arith.constant 0 : i32
    %c0_i32_0 = arith.constant 0 : i32
    %c0_i32_1 = arith.constant 0 : i32
    return %c0_i32, %c0_i32_0 : i32, i32
  }
  func.func @transform_2(%arg0: i32) -> (i32, i32) {
    %c0_i32 = arith.constant 0 : i32
    %c0_i32_0 = arith.constant 0 : i32
    %c0_i32_1 = arith.constant 0 : i32
    return %c0_i32, %c0_i32_0 : i32, i32
  }
  func.func @transform_3(%arg0: i32) -> (i32, i32) {
    %c0_i32 = arith.constant 0 : i32
    %c0_i32_0 = arith.constant 0 : i32
    return %c0_i32, %arg0 : i32, i32
  }
}

</mosaic_0001>

<bundles_post_ra>
// kernel: projection_forward.1
= control target key start
LH: loop header
LB: loop body
LE: loop exit
PB: predicated region body
PF: predicated region fallthrough
CT: control target
= control target key end

     0   :  { %8 = vsyncpa [#allocation3], 0  ;;  %s223_s12 = smov [#allocation2]   ;;  %s274_s0 = inlined_call_operand.hbm [shape: f32[32,16], index: 0, kind: input, shape index: {}]   ;;  %s275_s1 = inlined_call_operand.vmem [shape: f32[8,16], index: 1, kind: input, shape index: {}]   ;;  %s276_s2 = inlined_call_operand.vmem [shape: f32[8,1], index: 2, kind: input, shape index: {}]   ;;  %s277_s3 = inlined_call_operand.vmem [shape: f32[8,32], index: 3, kind: output, shape index: {}]  }
   0x1   :  { %s14_s13 = sshll.u32 %s223_s12, 4  ;;  %s199_s16 = scalar_lea.hbm %s274_s0, 512  ;;  %s15_s13 = int_to_ptr.vmem [resolvable:$true] %s14_s13 }
   0x2   :  { %p200_p0 = scmp.ne.s32.totalorder %s274_s0, %s199_s16  ;;  %p203_p1 = scmp.lt.u32.totalorder %s199_s16, %s274_s0 }
   0x4   :  { %p205_p2 = pnand %p203_p1, %p200_p0 }
   0x6   :  { %208 = shalt.err (!%p205_p2)
}
   0x7   :  { %s209_s21 = scalar_lea.vmem %s15_s13, 512  ;;  %p214_p4 = scmp.lt.s32.totalorder %s15_s13, %s15_s13 }
   0x8   :  { %p210_p3 = scmp.ne.s32.totalorder %s15_s13, %s209_s21  ;;  %p215_p5 = scmp.lt.s32.totalorder %s209_s21, %s209_s21 }
   0xa   :  { %p216_p6 = por %p215_p5, %p214_p4 }
   0xc   :  { %p217_p7 = pnand %p216_p6, %p210_p3 }
   0xe   :  { %220 = shalt.err (!%p217_p7)
}
   0xf   :  { %s224_s22 = smov 128   ;;  %s225_s23 = smov 8  }
  0x10   :  { %20 = dma.hbm_to_vmem [thread:$0]  %s274_s0, 512, %s15_s13, [#allocation3], %s224_s22, %s224_s22, %s225_s23  }
  0x11   :  { %221 = dma.done.wait [#allocation3], 512  }
  0x12   :  { %222 = vsyncadd [#allocation3], 4294966784  ;;  %v226_v0 = vmov 0.0|0.0   ;;  %vm227_vm0 = vmmov 0   ;;  %v228_v1 = vmov 0.0   ;;  %v229_v2 = vmov 0  }
  0x13   :  { %179 = vmatprep.subr.bf16.mxu0 %v226_v0  ;;  %176 = vmatprep.mubr.msk.f32.mxu0 %vm227_vm0, %v228_v1  ;;  %vm39_vm1 = vcmask 130048   ;;  %v28_v3 = vld [vmem:[#allocation2] sm:$0xff]  ;;  %v29_v4 = vld [vmem:[#allocation2 + $0x8] sm:$0xff]  ;;  %v30_v7 = vld [vmem:[#allocation2 + $0x10] sm:$0xff]  ;;  %v126_v11 = vlaneseq  ;;  %vm130_vm4 = vcmask 261120  }
  0x14   :  { %194 = vset.pattern.permute.xlu0 %v229_v2  ;;  %vm181_vm2 = vmpackc.low %vm39_vm1, %vm39_vm1  ;;  %v180_v5 = vpack.c.bf16 %v29_v4, %v28_v3  ;;  %v33_v6 = vld [vmem:[%s276_s2] sm:$0xff]  ;;  %v31_v8 = vld [vmem:[#allocation2 + $0x18] sm:$0xff] }
  0x15   :  { %36 = vperm.xlu0 %194, %v33_v6   ;;  %v184_v9 = vpack.c.bf16 %v31_v8, %v30_v7  ;;  %v32_v10 = vld [vmem:[%s275_s1] sm:$0xff]  ;;  %v127_v13 = vshrl.u32 %v126_v11, 7 }
  0x16   :  { %182 = vmatpush3.bf16.xpose.msk.msra.mxu0 %vm181_vm2, %v180_v5 }
  0x17   :  { %183 = vmatprep.subr.bf16.mxu0 %v226_v0  ;;  %vm128_vm3 = vcmp.lt.s32.totalorder %v127_v13, 3 }
  0x1e   :  { %186 = vmatpush3.bf16.xpose.msk.msra.mxu0 %vm181_vm2, %v184_v9 }
  0x25   :  { %177 = vmatmul.mubr.msk.f32.vlgmr.msra.gmra.mrb[0].mxu0 %vm39_vm1, %v32_v10 }
  0x94   :  { %v37_v12 = vpop.permute.xlu0 %36 }
  0xf8   :  { %v121_v14 = vpop.f32.mrb[0].mxu0 }
  0xf9   :  { %v122_v15 = vadd.f32 %v121_v14, %v37_v12  ;;  %v178_v16 = vpop.f32.mrb[1].mxu0 }
  0xfb   :  { %v125_v17 = vmax.f32 %v122_v15, 0.0 }
  0xfd   :  { %v129_v18 = vsel %vm128_vm3, %v125_v17, -1e+30 }
  0xfe   :  { %v131_v19 = vsel %vm130_vm4, %v129_v18, -inf }
  0xff   :  { %v132_v20 = vrot.slane %v131_v19, 4 }
 0x101   :  { %v133_v21 = vmax.f32 %v131_v19, %v132_v20 }
 0x103   :  { %v134_v22 = vrot.slane %v133_v21, 2 }
 0x105   :  { %v135_v23 = vmax.f32 %v133_v21, %v134_v22 }
 0x107   :  { %v136_v24 = vrot.slane %v135_v23, 1 }
 0x109   :  { %v137_v25 = vmax.f32 %v135_v23, %v136_v24 }
 0x10b   :  { %v138_v26 = vsub.f32 %v129_v18, %v137_v25 }
 0x10d   :  { %v139_v27 = vmul.f32 1.442695, %v138_v26 }
 0x10f   :  { %195 = vpow2.f32 %v139_v27 }
 0x119   :  { %v196_v28 = vpop.eup %195 }
 0x11a   :  { %v141_v29 = vsel %vm128_vm3, %v196_v28, 0.0 }
 0x11b   :  { %v142_v30 = vsel %vm130_vm4, %v141_v29, 0.0 }
 0x11c   :  { %v143_v31 = vrot.slane %v142_v30, 4 }
 0x11e   :  { %v144_v32 = vadd.f32 %v143_v31, %v142_v30 }
 0x120   :  { %v145_v33 = vrot.slane %v144_v32, 2 }
 0x122   :  { %v146_v34 = vadd.f32 %v145_v33, %v144_v32 }
 0x124   :  { %v147_v35 = vrot.slane %v146_v34, 1 }
 0x126   :  { %v148_v36 = vadd.f32 %v147_v35, %v146_v34 }
 0x128   :  { %197 = vlog2.f32 %v148_v36 }
 0x132   :  { %v198_v37 = vpop.eup %197 }
 0x133   :  { %v150_v38 = vmul.f32 0.6931472, %v198_v37 }
 0x135   :  { %v151_v39 = vsub.f32 %v138_v26, %v150_v38 }
 0x137   :  { %152 = vst.msk [vmem:[%s277_s3] sm:$0xff] %vm130_vm4, %v151_v39 }
 0x138   :  { %157 = vsyncpa [#allocation3], 1 }

</bundles_post_ra>
